<compile_context>
chip_gen: v7x
topology: tpu7x:2x2x1
jax: 0.10.0
libtpu: 0.0.40
codegen_flags: <defaults>
</compile_context>

<pallas_src>
import functools
import math

import jax
import jax.numpy as jnp
from jax.experimental import pallas as pl
from jax.experimental.pallas import tpu as pltpu


def encoder_kernel(emb_ref, w_e2h_ref, b_e2h_ref, wa_ref, ba_ref, wg_ref, bg_ref,
                   w_h2e_ref, b_h2e_ref, conved_ref, combined_ref, x_ref,
                   *, n_layers, kernel_size, seq_len):
    """One grid step = (one batch block) x (one conv layer)."""
    layer = pl.program_id(1)
    scale = jnp.float32(math.sqrt(0.5))
    pad = (kernel_size - 1) // 2
    BL, H = x_ref.shape                    # BL = batch_block * seq_len
    Bb = BL // seq_len
    E = emb_ref.shape[-1]

    # ---- prologue (layer 0): emb2hid linear into the persistent scratch ----
    @pl.when(layer == 0)
    def _():
        emb2 = emb_ref[...].reshape(BL, E).astype(jnp.bfloat16)
        x0 = jnp.dot(emb2, w_e2h_ref[...], preferred_element_type=jnp.float32)
        x_ref[...] = x0 + b_e2h_ref[...]   # bias folded into the init

    # ---- conv layer: K taps fused into one (BL, K*H)@(K*H, H) per GLU half ----
    x = x_ref[...]                         # (BL, H) f32
    # Row r <-> (batch b = r // L, position l = r % L).  Rolling the flattened
    # array along sublanes and masking positions whose shifted in-sequence index
    # falls outside [0, L) reproduces the zero-padded "same" convolution (rows
    # that would cross a batch boundary are exactly the masked ones).
    l_pos = jax.lax.broadcasted_iota(jnp.int32, (BL, H), 0) % seq_len
    taps = []
    for j in range(kernel_size):
        s = j - pad                        # tap j reads x[l + s]
        if s == 0:
            taps.append(x)
        else:
            rolled = pltpu.roll(x, shift=(-s) % BL, axis=0)
            valid = jnp.logical_and(l_pos + s >= 0, l_pos + s < seq_len)
            taps.append(jnp.where(valid, rolled, jnp.zeros_like(rolled)))
    x_taps = jnp.concatenate(taps, axis=-1).astype(jnp.bfloat16)   # (BL, K*H)

    a = jnp.dot(x_taps, wa_ref[0], preferred_element_type=jnp.float32) + ba_ref[0]
    g = jnp.dot(x_taps, wg_ref[0], preferred_element_type=jnp.float32) + bg_ref[0]
    x_new = (a * jax.nn.sigmoid(g) + x) * scale      # GLU + residual, f32
    x_ref[...] = x_new

    # ---- epilogue (last layer): hid2emb + residual combine, write outputs ----
    @pl.when(layer == n_layers - 1)
    def _():
        conved = jnp.dot(x_new.astype(jnp.bfloat16), w_h2e_ref[...],
                         preferred_element_type=jnp.float32) + b_h2e_ref[...]
        emb2 = emb_ref[...].reshape(BL, E)
        combined = (conved + emb2) * scale
        conved_ref[...] = conved.reshape(Bb, seq_len, E).astype(conved_ref.dtype)
        combined_ref[...] = combined.reshape(Bb, seq_len, E).astype(combined_ref.dtype)


def encoder_forward(src, params, *, n_layers, kernel_size, batch_block=None):
    (tok_table, pos_table, w_e2h, b_e2h, w_conv, b_conv, w_h2e, b_h2e) = params
    B, L = src.shape
    E = tok_table.shape[1]
    H = w_e2h.shape[1]
    K = kernel_size

    if batch_block is None:
        batch_block = B                    # whole batch per grid step at demo sizes
    assert B % batch_block == 0, "batch_block must divide batch"
    nb = B // batch_block

    # --- plain-JAX glue: embedding gathers (dropout = identity in eval) ---
    pos = jnp.arange(L, dtype=jnp.int32)
    tok_embedded = tok_table[src]                  # (B, L, E)
    pos_embedded = pos_table[pos][None, :, :]      # (1, L, E)
    embedded = (tok_embedded + pos_embedded).astype(jnp.float32)

    # --- one-time weight layout plumbing: bf16 MXU operands, fused conv taps ---
    # w_conv[i, j, c, o] == torch_conv_i.weight[o, c, j]; flattening (j, c) makes
    # the conv one deep contraction, and splitting the output channels gives the
    # GLU "a" and gate halves from separate matmuls (no 2H lane-slicing).
    w_e2h_b = w_e2h.astype(jnp.bfloat16)                       # (E, H)
    w_h2e_b = w_h2e.astype(jnp.bfloat16)                       # (H, E)
    w_conv_f = w_conv.reshape(n_layers, K * H, 2 * H)
    wa = w_conv_f[:, :, :H].astype(jnp.bfloat16)               # (n_layers, K*H, H)
    wg = w_conv_f[:, :, H:].astype(jnp.bfloat16)               # (n_layers, K*H, H)
    ba = b_conv[:, :, :H].astype(jnp.float32)                  # (n_layers, 1, H)
    bg = b_conv[:, :, H:].astype(jnp.float32)                  # (n_layers, 1, H)

    kernel = functools.partial(encoder_kernel, n_layers=n_layers,
                               kernel_size=K, seq_len=L)

    conved, combined = pl.pallas_call(
        kernel,
        out_shape=(jax.ShapeDtypeStruct((B, L, E), jnp.float32),
                   jax.ShapeDtypeStruct((B, L, E), jnp.float32)),
        grid_spec=pltpu.PrefetchScalarGridSpec(
            num_scalar_prefetch=0,
            grid=(nb, n_layers),
            in_specs=[
                pl.BlockSpec((batch_block, L, E), lambda b, i: (b, 0, 0)),   # embedded
                pl.BlockSpec((E, H), lambda b, i: (0, 0)),                   # w_e2h (bf16)
                pl.BlockSpec((1, H), lambda b, i: (0, 0)),                   # b_e2h
                pl.BlockSpec((1, K * H, H), lambda b, i: (i, 0, 0)),         # wa, layer i
                pl.BlockSpec((1, 1, H), lambda b, i: (i, 0, 0)),             # ba, layer i
                pl.BlockSpec((1, K * H, H), lambda b, i: (i, 0, 0)),         # wg, layer i
                pl.BlockSpec((1, 1, H), lambda b, i: (i, 0, 0)),             # bg, layer i
                pl.BlockSpec((H, E), lambda b, i: (0, 0)),                   # w_h2e (bf16)
                pl.BlockSpec((1, E), lambda b, i: (0, 0)),                   # b_h2e
            ],
            out_specs=[
                pl.BlockSpec((batch_block, L, E), lambda b, i: (b, 0, 0)),   # conved
                pl.BlockSpec((batch_block, L, E), lambda b, i: (b, 0, 0)),   # combined
            ],
            scratch_shapes=[pltpu.VMEM((batch_block * L, H), jnp.float32)],
        ),
        compiler_params=pltpu.CompilerParams(
            dimension_semantics=("parallel", "arbitrary"),
            vmem_limit_bytes=48 * 1024 * 1024,
        ),
    )(embedded, w_e2h_b, b_e2h, wa, ba, wg, bg, w_h2e_b, b_h2e)

    return conved, combined, embedded


def encoder_reference(embedded, params, *, n_layers, kernel_size):
    """Pure-JAX f32 reference (XLA codepath) for cross-checking."""
    (_, _, w_e2h, b_e2h, w_conv, b_conv, w_h2e, b_h2e) = params
    scale = jnp.float32(math.sqrt(0.5))
    pad = (kernel_size - 1) // 2
    H = w_e2h.shape[1]
    x = embedded @ w_e2h + b_e2h                        # (B, L, H)
    for i in range(n_layers):
        x_pad = jnp.pad(x, ((0, 0), (pad, pad), (0, 0)))
        acc = jnp.zeros(x.shape[:2] + (2 * H,), jnp.float32) + b_conv[i][None]
        for j in range(kernel_size):
            acc = acc + jnp.einsum('blh,ho->blo',
                                   x_pad[:, j:j + x.shape[1], :], w_conv[i, j])
        glu = acc[..., :H] * jax.nn.sigmoid(acc[..., H:])
        x = (glu + x) * scale
    conved = x @ w_h2e + b_h2e
    combined = (conved + embedded) * scale
    return conved, combined


if __name__ == "__main__":
    # Small shapes consistent with the module.
    B, L = 2, 8            # batch, src_len
    VOCAB = 50             # input_dim
    MAX_LEN = 100          # max_length
    E = 32                 # emb_dim
    H = 32                 # hid_dim
    N_LAYERS = 2
    K = 3                  # kernel_size (odd, as the module asserts)

    key = jax.random.PRNGKey(0)
    ks = jax.random.split(key, 9)

    # Deterministic synthetic parameters (shapes from the module's __init__).
    tok_table = 0.1 * jax.random.normal(ks[0], (VOCAB, E), jnp.float32)
    pos_table = 0.1 * jax.random.normal(ks[1], (MAX_LEN, E), jnp.float32)
    w_e2h = 0.1 * jax.random.normal(ks[2], (E, H), jnp.float32)          # torch weight.T
    b_e2h = 0.1 * jax.random.normal(ks[3], (1, H), jnp.float32)
    # torch conv weight (2H, H, K) stored here as (n_layers, K, H, 2H):
    # w_conv[i, j, c, o] == torch_conv_i.weight[o, c, j]
    w_conv = 0.1 * jax.random.normal(ks[4], (N_LAYERS, K, H, 2 * H), jnp.float32)
    b_conv = 0.1 * jax.random.normal(ks[5], (N_LAYERS, 1, 2 * H), jnp.float32)
    w_h2e = 0.1 * jax.random.normal(ks[6], (H, E), jnp.float32)          # torch weight.T
    b_h2e = 0.1 * jax.random.normal(ks[7], (1, E), jnp.float32)

    params = (tok_table, pos_table, w_e2h, b_e2h, w_conv, b_conv, w_h2e, b_h2e)

    src = jax.random.randint(ks[8], (B, L), 0, VOCAB, dtype=jnp.int32)

    conved, combined, embedded = encoder_forward(
        src, params, n_layers=N_LAYERS, kernel_size=K)
    jax.block_until_ready((conved, combined))

    # Cross-check against the pure-JAX f32 reference (kernel matmuls are bf16
    # with f32 accumulation, so use a bf16-appropriate tolerance).
    conved_ref, combined_ref = encoder_reference(
        embedded, params, n_layers=N_LAYERS, kernel_size=K)
    assert jnp.allclose(conved, conved_ref, rtol=2e-2, atol=2e-2)
    assert jnp.allclose(combined, combined_ref, rtol=2e-2, atol=2e-2)

    print("KERNEL_OK")
</pallas_src>

<mosaic_0001>
module attributes {stable_mosaic.version = 11 : i64} {
  func.func @encoder_kernel(%arg0: i32, %arg1: i32, %arg2: memref<2x8x32xf32, #tpu.memory_space<vmem>>, %arg3: memref<32x32xbf16, #tpu.memory_space<vmem>>, %arg4: memref<1x32xf32, #tpu.memory_space<vmem>>, %arg5: memref<1x96x32xbf16, #tpu.memory_space<vmem>>, %arg6: memref<1x1x32xf32, #tpu.memory_space<vmem>>, %arg7: memref<1x96x32xbf16, #tpu.memory_space<vmem>>, %arg8: memref<1x1x32xf32, #tpu.memory_space<vmem>>, %arg9: memref<32x32xbf16, #tpu.memory_space<vmem>>, %arg10: memref<1x32xf32, #tpu.memory_space<vmem>>, %arg11: memref<2x8x32xf32, #tpu.memory_space<vmem>>, %arg12: memref<2x8x32xf32, #tpu.memory_space<vmem>>, %arg13: memref<16x32xf32, #tpu.memory_space<vmem>>) attributes {dimension_semantics = [#tpu.dimension_semantics<parallel>, #tpu.dimension_semantics<arbitrary>], iteration_bounds = array<i64: 1, 2>, scalar_prefetch = 0 : i64, scratch_operands = 1 : i64, tpu.core_type = #tpu.core_type<tc>, window_params = [{transform_indices = @transform_0, window_bounds = array<i64: 2, 8, 32>}, {pipeline_mode = #tpu.pipeline_mode<synchronous>, transform_indices = @transform_1, window_bounds = array<i64: 32, 32>}, {pipeline_mode = #tpu.pipeline_mode<synchronous>, transform_indices = @transform_2, window_bounds = array<i64: 1, 32>}, {transform_indices = @transform_3, window_bounds = array<i64: 1, 96, 32>}, {transform_indices = @transform_4, window_bounds = array<i64: 1, 1, 32>}, {transform_indices = @transform_5, window_bounds = array<i64: 1, 96, 32>}, {transform_indices = @transform_6, window_bounds = array<i64: 1, 1, 32>}, {pipeline_mode = #tpu.pipeline_mode<synchronous>, transform_indices = @transform_7, window_bounds = array<i64: 32, 32>}, {pipeline_mode = #tpu.pipeline_mode<synchronous>, transform_indices = @transform_8, window_bounds = array<i64: 1, 32>}, {transform_indices = @transform_9, window_bounds = array<i64: 2, 8, 32>}, {transform_indices = @transform_10, window_bounds = array<i64: 2, 8, 32>}]} {
    %c0_i32 = arith.constant 0 : i32
    %0 = arith.cmpi eq, %arg1, %c0_i32 : i32
    %1 = arith.extui %0 : i1 to i32
    %c0_i32_0 = arith.constant 0 : i32
    %2 = arith.cmpi ne, %1, %c0_i32_0 : i32
    scf.if %2 {
      %c0_36 = arith.constant 0 : index
      %c0_37 = arith.constant 0 : index
      %c0_38 = arith.constant 0 : index
      %74 = vector.load %arg2[%c0_36, %c0_37, %c0_38] : memref<2x8x32xf32, #tpu.memory_space<vmem>>, vector<2x8x32xf32>
      %75 = vector.shape_cast %74 : vector<2x8x32xf32> to vector<16x32xf32>
      %76 = arith.truncf %75 : vector<16x32xf32> to vector<16x32xbf16>
      %c0_39 = arith.constant 0 : index
      %c0_40 = arith.constant 0 : index
      %77 = vector.load %arg3[%c0_39, %c0_40] : memref<32x32xbf16, #tpu.memory_space<vmem>>, vector<32x32xbf16>
      %cst_41 = arith.constant dense<0.000000e+00> : vector<16x32xf32>
      %78 = tpu.matmul %76, %77, %cst_41 {dimension_numbers = #tpu.dot_dimension_numbers<[1], [0], [0], [1], [0, 0, 1, 1], [], []>} : vector<16x32xbf16>, vector<32x32xbf16>, vector<16x32xf32> -> vector<16x32xf32>
      %c0_42 = arith.constant 0 : index
      %c0_43 = arith.constant 0 : index
      %79 = vector.load %arg4[%c0_42, %c0_43] : memref<1x32xf32, #tpu.memory_space<vmem>>, vector<1x32xf32>
      %80 = vector.broadcast %79 : vector<1x32xf32> to vector<16x32xf32>
      %81 = arith.addf %78, %80 : vector<16x32xf32>
      %c0_44 = arith.constant 0 : index
      %c0_45 = arith.constant 0 : index
      %82 = vector.load %arg13[%c0_44, %c0_45] : memref<16x32xf32, #tpu.memory_space<vmem>>, vector<16x32xf32>
      tpu.vector_store %arg13[%c0_44, %c0_45], %81 {strides = array<i32>} : memref<16x32xf32, #tpu.memory_space<vmem>>, vector<16x32xf32>,
    } else {
    }
    %c0 = arith.constant 0 : index
    %c0_1 = arith.constant 0 : index
    %3 = vector.load %arg13[%c0, %c0_1] : memref<16x32xf32, #tpu.memory_space<vmem>>, vector<16x32xf32>
    %4 = tpu.iota {dimensions = array<i32: 0>} : vector<16x32xi32>
    %c8_i32 = arith.constant 8 : i32
    %c0_i32_2 = arith.constant 0 : i32
    %5 = arith.cmpi eq, %c8_i32, %c0_i32_2 : i32
    %c1_i32 = arith.constant 1 : i32
    %6 = arith.select %5, %c1_i32, %c8_i32 : i32
    %7 = vector.broadcast %6 : i32 to vector<16x32xi32>
    %8 = arith.remsi %4, %7 : vector<16x32xi32>
    %c0_i32_3 = arith.constant 0 : i32
    %9 = vector.broadcast %c0_i32_3 : i32 to vector<16x32xi32>
    %10 = arith.cmpi ne, %8, %9 : vector<16x32xi32>
    %c0_i32_4 = arith.constant 0 : i32
    %11 = vector.broadcast %c0_i32_4 : i32 to vector<16x32xi32>
    %12 = arith.cmpi slt, %8, %11 : vector<16x32xi32>
    %c0_i32_5 = arith.constant 0 : i32
    %13 = arith.cmpi slt, %6, %c0_i32_5 : i32
    %14 = vector.broadcast %13 : i1 to vector<16x32xi1>
    %15 = vector.broadcast %14 : vector<16x32xi1> to vector<16x32xi1>
    %16 = arith.xori %12, %15 : vector<16x32xi1>
    %17 = arith.andi %16, %10 : vector<16x32xi1>
    %18 = vector.broadcast %6 : i32 to vector<16x32xi32>
    %19 = arith.addi %8, %18 : vector<16x32xi32>
    %20 = arith.select %17, %19, %8 : vector<16x32xi1>, vector<16x32xi32>
    %c1_i32_6 = arith.constant 1 : i32
    %21 = tpu.dynamic_rotate %3 by %c1_i32_6 dim 0 : vector<16x32xf32>, i32 -> vector<16x32xf32>
    %c-1_i32 = arith.constant -1 : i32
    %22 = vector.broadcast %c-1_i32 : i32 to vector<16x32xi32>
    %23 = arith.addi %20, %22 : vector<16x32xi32>
    %c0_i32_7 = arith.constant 0 : i32
    %24 = vector.broadcast %c0_i32_7 : i32 to vector<16x32xi32>
    %25 = arith.cmpi sge, %23, %24 : vector<16x32xi32>
    %c-1_i32_8 = arith.constant -1 : i32
    %26 = vector.broadcast %c-1_i32_8 : i32 to vector<16x32xi32>
    %27 = arith.addi %20, %26 : vector<16x32xi32>
    %c8_i32_9 = arith.constant 8 : i32
    %28 = vector.broadcast %c8_i32_9 : i32 to vector<16x32xi32>
    %29 = arith.cmpi slt, %27, %28 : vector<16x32xi32>
    %30 = arith.andi %25, %29 : vector<16x32xi1>
    %cst = arith.constant 0.000000e+00 : f32
    %31 = vector.broadcast %cst : f32 to vector<16x32xf32>
    %32 = arith.select %30, %21, %31 : vector<16x32xi1>, vector<16x32xf32>
    %c15_i32 = arith.constant 15 : i32
    %33 = tpu.dynamic_rotate %3 by %c15_i32 dim 0 : vector<16x32xf32>, i32 -> vector<16x32xf32>
    %c1_i32_10 = arith.constant 1 : i32
    %34 = vector.broadcast %c1_i32_10 : i32 to vector<16x32xi32>
    %35 = arith.addi %20, %34 : vector<16x32xi32>
    %c0_i32_11 = arith.constant 0 : i32
    %36 = vector.broadcast %c0_i32_11 : i32 to vector<16x32xi32>
    %37 = arith.cmpi sge, %35, %36 : vector<16x32xi32>
    %c1_i32_12 = arith.constant 1 : i32
    %38 = vector.broadcast %c1_i32_12 : i32 to vector<16x32xi32>
    %39 = arith.addi %20, %38 : vector<16x32xi32>
    %c8_i32_13 = arith.constant 8 : i32
    %40 = vector.broadcast %c8_i32_13 : i32 to vector<16x32xi32>
    %41 = arith.cmpi slt, %39, %40 : vector<16x32xi32>
    %42 = arith.andi %37, %41 : vector<16x32xi1>
    %cst_14 = arith.constant 0.000000e+00 : f32
    %43 = vector.broadcast %cst_14 : f32 to vector<16x32xf32>
    %44 = arith.select %42, %33, %43 : vector<16x32xi1>, vector<16x32xf32>
    %45 = tpu.concatenate %32, %3, %44 in 1 : vector<16x32xf32>, vector<16x32xf32>, vector<16x32xf32> -> vector<16x96xf32>
    %46 = arith.truncf %45 : vector<16x96xf32> to vector<16x96xbf16>
    %c0_15 = arith.constant 0 : index
    %c0_16 = arith.constant 0 : index
    %c0_17 = arith.constant 0 : index
    %47 = vector.load %arg5[%c0_15, %c0_16, %c0_17] : memref<1x96x32xbf16, #tpu.memory_space<vmem>>, vector<1x96x32xbf16>
    %48 = vector.shape_cast %47 : vector<1x96x32xbf16> to vector<96x32xbf16>
    %cst_18 = arith.constant dense<0.000000e+00> : vector<16x32xf32>
    %49 = tpu.matmul %46, %48, %cst_18 {dimension_numbers = #tpu.dot_dimension_numbers<[1], [0], [0], [1], [0, 0, 1, 1], [], []>} : vector<16x96xbf16>, vector<96x32xbf16>, vector<16x32xf32> -> vector<16x32xf32>
    %c0_19 = arith.constant 0 : index
    %c0_20 = arith.constant 0 : index
    %c0_21 = arith.constant 0 : index
    %50 = vector.load %arg6[%c0_19, %c0_20, %c0_21] : memref<1x1x32xf32, #tpu.memory_space<vmem>>, vector<1x1x32xf32>
    %51 = vector.shape_cast %50 : vector<1x1x32xf32> to vector<1x32xf32>
    %52 = vector.broadcast %51 : vector<1x32xf32> to vector<16x32xf32>
    %53 = arith.addf %49, %52 : vector<16x32xf32>
    %c0_22 = arith.constant 0 : index
    %c0_23 = arith.constant 0 : index
    %c0_24 = arith.constant 0 : index
    %54 = vector.load %arg7[%c0_22, %c0_23, %c0_24] : memref<1x96x32xbf16, #tpu.memory_space<vmem>>, vector<1x96x32xbf16>
    %55 = vector.shape_cast %54 : vector<1x96x32xbf16> to vector<96x32xbf16>
    %cst_25 = arith.constant dense<0.000000e+00> : vector<16x32xf32>
    %56 = tpu.matmul %46, %55, %cst_25 {dimension_numbers = #tpu.dot_dimension_numbers<[1], [0], [0], [1], [0, 0, 1, 1], [], []>} : vector<16x96xbf16>, vector<96x32xbf16>, vector<16x32xf32> -> vector<16x32xf32>
    %c0_26 = arith.constant 0 : index
    %c0_27 = arith.constant 0 : index
    %c0_28 = arith.constant 0 : index
    %57 = vector.load %arg8[%c0_26, %c0_27, %c0_28] : memref<1x1x32xf32, #tpu.memory_space<vmem>>, vector<1x1x32xf32>
    %58 = vector.shape_cast %57 : vector<1x1x32xf32> to vector<1x32xf32>
    %59 = vector.broadcast %58 : vector<1x32xf32> to vector<16x32xf32>
    %60 = arith.addf %56, %59 : vector<16x32xf32>
    %61 = arith.negf %60 : vector<16x32xf32>
    %62 = math.exp %61 : vector<16x32xf32>
    %cst_29 = arith.constant 1.000000e+00 : f32
    %63 = vector.broadcast %cst_29 : f32 to vector<16x32xf32>
    %64 = arith.addf %63, %62 : vector<16x32xf32>
    %65 = arith.divf %63, %64 : vector<16x32xf32>
    %66 = arith.mulf %53, %65 : vector<16x32xf32>
    %67 = arith.addf %66, %3 : vector<16x32xf32>
    %cst_30 = arith.constant 0.707106769 : f32
    %68 = vector.broadcast %cst_30 : f32 to vector<16x32xf32>
    %69 = arith.mulf %67, %68 : vector<16x32xf32>
    %c0_31 = arith.constant 0 : index
    %c0_32 = arith.constant 0 : index
    %70 = vector.load %arg13[%c0_31, %c0_32] : memref<16x32xf32, #tpu.memory_space<vmem>>, vector<16x32xf32>
    tpu.vector_store %arg13[%c0_31, %c0_32], %69 {strides = array<i32>} : memref<16x32xf32, #tpu.memory_space<vmem>>, vector<16x32xf32>,
    %c1_i32_33 = arith.constant 1 : i32
    %71 = arith.cmpi eq, %arg1, %c1_i32_33 : i32
    %72 = arith.extui %71 : i1 to i32
    %cst_34 = arith.constant 0.707106769 : f32
    %c0_i32_35 = arith.constant 0 : i32
    %73 = arith.cmpi ne, %72, %c0_i32_35 : i32
    scf.if %73 {
      %74 = arith.truncf %69 : vector<16x32xf32> to vector<16x32xbf16>
      %c0_36 = arith.constant 0 : index
      %c0_37 = arith.constant 0 : index
      %75 = vector.load %arg9[%c0_36, %c0_37] : memref<32x32xbf16, #tpu.memory_space<vmem>>, vector<32x32xbf16>
      %cst_38 = arith.constant dense<0.000000e+00> : vector<16x32xf32>
      %76 = tpu.matmul %74, %75, %cst_38 {dimension_numbers = #tpu.dot_dimension_numbers<[1], [0], [0], [1], [0, 0, 1, 1], [], []>} : vector<16x32xbf16>, vector<32x32xbf16>, vector<16x32xf32> -> vector<16x32xf32>
      %c0_39 = arith.constant 0 : index
      %c0_40 = arith.constant 0 : index
      %77 = vector.load %arg10[%c0_39, %c0_40] : memref<1x32xf32, #tpu.memory_space<vmem>>, vector<1x32xf32>
      %78 = vector.broadcast %77 : vector<1x32xf32> to vector<16x32xf32>
      %79 = arith.addf %76, %78 : vector<16x32xf32>
      %c0_41 = arith.constant 0 : index
      %c0_42 = arith.constant 0 : index
      %c0_43 = arith.constant 0 : index
      %80 = vector.load %arg2[%c0_41, %c0_42, %c0_43] : memref<2x8x32xf32, #tpu.memory_space<vmem>>, vector<2x8x32xf32>
      %81 = vector.shape_cast %80 : vector<2x8x32xf32> to vector<16x32xf32>
      %82 = arith.addf %79, %81 : vector<16x32xf32>
      %83 = vector.broadcast %cst_34 : f32 to vector<16x32xf32>
      %84 = arith.mulf %82, %83 : vector<16x32xf32>
      %85 = vector.shape_cast %79 : vector<16x32xf32> to vector<2x8x32xf32>
      %c0_44 = arith.constant 0 : index
      %c0_45 = arith.constant 0 : index
      %c0_46 = arith.constant 0 : index
      %86 = vector.load %arg11[%c0_44, %c0_45, %c0_46] : memref<2x8x32xf32, #tpu.memory_space<vmem>>, vector<2x8x32xf32>
      tpu.vector_store %arg11[%c0_44, %c0_45, %c0_46], %85 {strides = array<i32>} : memref<2x8x32xf32, #tpu.memory_space<vmem>>, vector<2x8x32xf32>,
      %87 = vector.shape_cast %84 : vector<16x32xf32> to vector<2x8x32xf32>
      %c0_47 = arith.constant 0 : index
      %c0_48 = arith.constant 0 : index
      %c0_49 = arith.constant 0 : index
      %88 = vector.load %arg12[%c0_47, %c0_48, %c0_49] : memref<2x8x32xf32, #tpu.memory_space<vmem>>, vector<2x8x32xf32>
      tpu.vector_store %arg12[%c0_47, %c0_48, %c0_49], %87 {strides = array<i32>} : memref<2x8x32xf32, #tpu.memory_space<vmem>>, vector<2x8x32xf32>,
    } else {
    }
    return
  }
  func.func @transform_0(%arg0: i32, %arg1: i32) -> (i32, i32, i32) {
    %c0_i32 = arith.constant 0 : i32
    %c0_i32_0 = arith.constant 0 : i32
    %c0_i32_1 = arith.constant 0 : i32
    return %arg0, %c0_i32, %c0_i32_0 : i32, i32, i32
  }
  func.func @transform_1(%arg0: i32, %arg1: i32) -> (i32, i32) {
    %c0_i32 = arith.constant 0 : i32
    %c0_i32_0 = arith.constant 0 : i32
    %c0_i32_1 = arith.constant 0 : i32
    return %c0_i32, %c0_i32_0 : i32, i32
  }
  func.func @transform_2(%arg0: i32, %arg1: i32) -> (i32, i32) {
    %c0_i32 = arith.constant 0 : i32
    %c0_i32_0 = arith.constant 0 : i32
    %c0_i32_1 = arith.constant 0 : i32
    return %c0_i32, %c0_i32_0 : i32, i32
  }
  func.func @transform_3(%arg0: i32, %arg1: i32) -> (i32, i32, i32) {
    %c0_i32 = arith.constant 0 : i32
    %c0_i32_0 = arith.constant 0 : i32
    %c0_i32_1 = arith.constant 0 : i32
    return %arg1, %c0_i32, %c0_i32_0 : i32, i32, i32
  }
  func.func @transform_4(%arg0: i32, %arg1: i32) -> (i32, i32, i32) {
    %c0_i32 = arith.constant 0 : i32
    %c0_i32_0 = arith.constant 0 : i32
    %c0_i32_1 = arith.constant 0 : i32
    return %arg1, %c0_i32, %c0_i32_0 : i32, i32, i32
  }
  func.func @transform_5(%arg0: i32, %arg1: i32) -> (i32, i32, i32) {
    %c0_i32 = arith.constant 0 : i32
    %c0_i32_0 = arith.constant 0 : i32
    %c0_i32_1 = arith.constant 0 : i32
    return %arg1, %c0_i32, %c0_i32_0 : i32, i32, i32
  }
  func.func @transform_6(%arg0: i32, %arg1: i32) -> (i32, i32, i32) {
    %c0_i32 = arith.constant 0 : i32
    %c0_i32_0 = arith.constant 0 : i32
    %c0_i32_1 = arith.constant 0 : i32
    return %arg1, %c0_i32, %c0_i32_0 : i32, i32, i32
  }
  func.func @transform_7(%arg0: i32, %arg1: i32) -> (i32, i32) {
    %c0_i32 = arith.constant 0 : i32
    %c0_i32_0 = arith.constant 0 : i32
    %c0_i32_1 = arith.constant 0 : i32
    return %c0_i32, %c0_i32_0 : i32, i32
  }
  func.func @transform_8(%arg0: i32, %arg1: i32) -> (i32, i32) {
    %c0_i32 = arith.constant 0 : i32
    %c0_i32_0 = arith.constant 0 : i32
    %c0_i32_1 = arith.constant 0 : i32
    return %c0_i32, %c0_i32_0 : i32, i32
  }
  func.func @transform_9(%arg0: i32, %arg1: i32) -> (i32, i32, i32) {
    %c0_i32 = arith.constant 0 : i32
    %c0_i32_0 = arith.constant 0 : i32
    %c0_i32_1 = arith.constant 0 : i32
    return %arg0, %c0_i32, %c0_i32_0 : i32, i32, i32
  }
  func.func @transform_10(%arg0: i32, %arg1: i32) -> (i32, i32, i32) {
    %c0_i32 = arith.constant 0 : i32
    %c0_i32_0 = arith.constant 0 : i32
    %c0_i32_1 = arith.constant 0 : i32
    return %arg0, %c0_i32, %c0_i32_0 : i32, i32, i32
  }
}

</mosaic_0001>

<bundles_post_ra>
// kernel: tpu_custom_call.1
= control target key start
LH: loop header
LB: loop body
LE: loop exit
PB: predicated region body
PF: predicated region fallthrough
CT: control target
= control target key end

     0   :  { %16 = vsyncpa [#allocation4], 0  ;;  %s1568_s0 = inlined_call_operand.vmem [shape: f32[2,8,32], index: 0, kind: input, shape index: {}]   ;;  %s1569_s1 = inlined_call_operand.vmem [shape: bf16[32,32], index: 1, kind: input, shape index: {}]   ;;  %s1570_s2 = inlined_call_operand.vmem [shape: f32[1,32], index: 2, kind: input, shape index: {}]   ;;  %s1571_s3 = inlined_call_operand.vmem [shape: bf16[2,96,32], index: 3, kind: input, shape index: {}]   ;;  %s1572_s4 = inlined_call_operand.vmem [shape: f32[2,1,32], index: 4, kind: input, shape index: {}]   ;;  %s1573_s5 = inlined_call_operand.vmem [shape: bf16[2,96,32], index: 5, kind: input, shape index: {}]   ;;  %s1574_s6 = inlined_call_operand.vmem [shape: f32[2,1,32], index: 6, kind: input, shape index: {}]   ;;  %s1575_s7 = inlined_call_operand.vmem [shape: bf16[32,32], index: 7, kind: input, shape index: {}]   ;;  %s1576_s8 = inlined_call_operand.vmem [shape: f32[1,32], index: 8, kind: input, shape index: {}]   ;;  %s1577_s9 = inlined_call_operand.hbm [shape: f32[2,8,32], index: 9, kind: output, shape index: {0}]   ;;  %s1578_s10 = inlined_call_operand.hbm [shape: f32[2,8,32], index: 10, kind: output, shape index: {1}]  }
   0x1   :  { %17 = vsyncpa [#allocation6], 0  ;;  %s1376_s13 = smov 0   ;;  %s1378_s14 = smov 0  }
   0x2   :  { %s1380_s15 = smov 0  }
   0x3 LB: > { %s1033_s16 = sadd.s32 4294967295, %s1307_s15   ;;  %s32_s17 = sadd.s32 1, %s1303_s14  ;;  %s1307_s15 = sphi %s1380_s15, %s23_s15   ;;  %s1303_s14 = sphi %s1378_s14, %s1581_s14   ;;  %s1299_s13 = sphi %s1376_s13, %s1580_s13  }
   0x4   : > { %p33_p0 = scmp.ge.s32.totalorder %s32_s17, 2  ;;  %p1037_p1 = scmp.ge.s32.totalorder %s1307_s15, 1 }
   0x5   : > { %p366_p2 = scmp.lt.s32.totalorder %s1307_s15, 3 }
   0x6   : > { %s1583_s17 = smov (%p33_p0, %s32_s17), 0 }
   0x7   : > { %p367_p3 = pnand %p1037_p1, %p366_p2 }
   0x8   : > { %p421_p4 = scmp.lt.s32.totalorder (!%p367_p3), %s1299_s13, 1  ;;  %p1040_p5 = scmp.ne.s32.totalorder (!%p367_p3), %s1299_s13, 0 }
   0x9   : > { %370 = sbr.rel (%p367_p3) target bundleno = 899 (0x383), region = 56 }
  0x10   : > { %s1399_s18 = scalar_select %p421_p4, %s1299_s13, 1 }
  0x11   : > { %443 = sbr.rel (%p1040_p5) target bundleno = 243 (0xf3), region = 60  ;;  %v1191_v0 = vld [vmem:[%s1569_s1] sm:$0xff] (!%p1040_p5)   ;;  %v1309_v1 = vmov (!%p1040_p5), 0.0   ;;  %v1192_v2 = vld [vmem:[%s1569_s1 + $0x8] sm:$0xff] (!%p1040_p5)   ;;  %vm1310_vm0 = vmmov (!%p1040_p5), 0   ;;  %vm470_vm1 = vcmask (!%p1040_p5), 261120  }
  0x12   : > { %s1142_s19 = smul.u32 48, %s1399_s18  ;;  %s428_s22 = scalar_lea.vmem %s1572_s4, %s1399_s18  ;;  %1094 = vmatprep.subr.bf16.mxu0 (!%p1040_p5), %v1309_v1  ;;  %1098 = vmatprep.mubr.msk.bf16.mxu0 (!%p1040_p5), %vm1310_vm0, %v1309_v1  ;;  %v444_v3 = vld [vmem:[%s1568_s0] sm:$0xff] (!%p1040_p5)  ;;  %v445_v4 = vld [vmem:[%s1568_s0 + $0x8] sm:$0xff] (!%p1040_p5) }
  0x13   : > { %s436_s25 = scalar_lea.vmem %s1574_s6, %s1399_s18  ;;  %1095 = vmatpush3.bf16.msra.mxu0 (!%p1040_p5), %v1191_v0  ;;  %v446_v5 = vpack.c.bf16 (!%p1040_p5), %v445_v4, %v444_v3  ;;  %v1041_v6 = vld [vmem:[%s1570_s2] ss:$0 sm:$0xff] (!%p1040_p5) }
  0x14   : > { %s1413_s28 = scalar_lea.vmem %s1571_s3, %s1142_s19  ;;  %s1418_s11 = scalar_lea.vmem %s1573_s5, %s1142_s19  ;;  %1096 = vmatprep.subr.bf16.mxu0 (!%p1040_p5), %v1309_v1 }
  0x17   : > { %1097 = vmatpush3.bf16.msra.mxu0 (!%p1040_p5), %v1192_v2 }
  0x1a   : > { %1099 = vmatmul.mubr.msk.bf16.vlgmr.msra.gmra.mrb[0].mxu0 %vm470_vm1, %v446_v5 }
  0xed   : > { %v508_v7 = vpop.f32.mrb[0].mxu0 }
  0xee   : > { %v509_v8 = vadd.f32 %v1041_v6, %v508_v7  ;;  %v1100_v9 = vpop.f32.mrb[1].mxu0 }
  0xef   : > { %v511_v10 = vpop.f32.mrb[2].mxu0 }
  0xf0   : > { %515 = vst.msk [vmem:[#allocation2] sm:$0xff] %vm470_vm1, %v509_v8  ;;  %v512_v11 = vadd.f32 %v1041_v6, %v511_v10  ;;  %v1101_v12 = vpop.f32.mrb[3].mxu0 }
  0xf2   : > { %516 = vst.msk [vmem:[#allocation2 + $0x8] sm:$0xff] %vm470_vm1, %v512_v11 }
  0xf3 PF: > { %v519_v15 = vlaneseq  ;;  %v1203_v16 = vld [vmem:[%s1413_s28] sm:$0xff]   ;;  %v1311_v20 = vmov 0.0   ;;  %s1312_s12 = smov 32   ;;  %v1205_v23 = vld [vmem:[%s1413_s28 + $0x8] sm:$0xff]   ;;  %v1207_v30 = vld [vmem:[%s1413_s28 + $0x10] sm:$0xff]   ;;  %s1313_s20 = smov 64  }
  0xf4   : > { %1102 = vmatprep.subr.bf16.mxu0 %v1311_v20  ;;  %1118 = vmatprep.subr.bf16.mxu1 %v1311_v20  ;;  %v1204_v22 = vld [vmem:[%s1418_s11] sm:$0xff]   ;;  %v1206_v26 = vld [vmem:[%s1418_s11 + $0x8] sm:$0xff]   ;;  %v1208_v33 = vld [vmem:[%s1418_s11 + $0x10] sm:$0xff]   ;;  %vm1314_vm8 = vmmov 0   ;;  %vm592_vm9 = vcmask 261120   ;;  %vm595_vm10 = vcmask 523264  }
  0xf5   : > { %v520_v21 = vshrl.u32 %v519_v15, 7  ;;  %1103 = vmatpush3.bf16.msra.mxu0 %v1203_v16  ;;  %1119 = vmatpush3.bf16.msra.mxu1 %v1204_v22  ;;  %v1209_v38 = vld [vmem:[%s1413_s28 + $0x18] sm:$0xff]   ;;  %v1211_v47 = vld [vmem:[%s1413_s28 + $0x20] sm:$0xff]   ;;  %v1213_v49 = vld [vmem:[%s1413_s28 + $0x28] sm:$0xff]   ;;  %vm654_vm11 = vcmask 785408   ;;  %p1063_p6 = scmp.ne.s32.totalorder %s1299_s13, 1 }
  0xf6   : > { %1104 = vmatprep.subr.bf16.mxu0 %v1311_v20  ;;  %1120 = vmatprep.subr.bf16.mxu1 %v1311_v20  ;;  %v1210_v42 = vld [vmem:[%s1418_s11 + $0x18] sm:$0xff]   ;;  %v1212_v48 = vld [vmem:[%s1418_s11 + $0x20] sm:$0xff]   ;;  %v1214_v50 = vld [vmem:[%s1418_s11 + $0x28] sm:$0xff]   ;;  %vm1316_vm12 = vmmov (!%p1063_p6), 0  }
  0xf7   : > { %v1436_v13 = vld [vmem:[#allocation2] sm:$0xff]  ;;  %v521_v24 = vadd.s32 8, %v520_v21  ;;  %v526_v25 = vand.u32 7, %v520_v21  ;;  %vm563_vm2 = vcmp.lt.s32.totalorder %v520_v21, 7  ;;  %vm548_vm4 = vcmp.lt.s32.totalorder %v520_v21, 1  ;;  %1114 = vmatprep.mubr.msk.bf16.mxu0 %vm1314_vm8, %v1311_v20  ;;  %1130 = vmatprep.mubr.msk.bf16.mxu1 %vm1314_vm8, %v1311_v20 }
  0xf8   : > { %v561_v18 = vrot.slane %v1436_v13, 1  ;;  %v546_v39 = vrot.slane %v1436_v13, 7  ;;  %v1053_v62 = vld [vmem:[%s436_s25] ss:$0 sm:$0xff] }
  0xf9   : > { %v1438_v14 = vld [vmem:[#allocation2 + $0x8] sm:$0xff]  ;;  %v533_v27 = vand.u32 7, %v521_v24  ;;  %v566_v29 = vadd.s32 1, %v526_v25  ;;  %1105 = vmatpush3.bf16.msra.mxu0 %v1205_v23  ;;  %1121 = vmatpush3.bf16.msra.mxu1 %v1206_v26  ;;  %v551_v36 = vadd.s32 4294967295, %v526_v25 }
  0xfa   : > { %v1193_v17 = vpack.i.bf16 %v1438_v14, %v1436_v13  ;;  %v562_v19 = vrot.slane %v1438_v14, 1  ;;  %1106 = vmatprep.subr.bf16.mxu0 %v1311_v20  ;;  %v547_v34 = vrot.slane %v1438_v14, 7  ;;  %1122 = vmatprep.subr.bf16.mxu1 %v1311_v20 }
  0xfb   : > { %v567_v32 = vadd.s32 1, %v533_v27  ;;  %vm570_vm3 = vcmp.lt.s32.totalorder %v566_v29, 8  ;;  %v552_v37 = vadd.s32 4294967295, %v533_v27  ;;  %vm553_vm6 = vcmp.ge.s32.totalorder %v551_v36, 0  ;;  %v888_v36 = vld [vmem:[%s1568_s0 + $0x8] sm:$0xff] (!%p1063_p6) }
  0xfc   : > { %1194 = vrot.lane.b32.xlu0 %v1193_v17, %s1312_s12  ;;  %v564_v28 = vsel %vm563_vm2, %v561_v18, %v562_v19  ;;  %v565_v31 = vsel %vm563_vm2, %v562_v19, %v561_v18  ;;  %v549_v43 = vsel %vm548_vm4, %v546_v39, %v547_v34  ;;  %v550_v44 = vsel %vm548_vm4, %v547_v34, %v546_v39  ;;  %v1045_v17 = vld [vmem:[%s428_s22] ss:$0 sm:$0xff] }
  0xfd   : > { %v574_v35 = vsel %vm570_vm3, %v564_v28, 0.0  ;;  %vm571_vm5 = vcmp.lt.s32.totalorder %v567_v32, 8  ;;  %1107 = vmatpush3.bf16.msra.mxu0 %v1207_v30  ;;  %vm554_vm7 = vcmp.ge.s32.totalorder %v552_v37, 0  ;;  %1123 = vmatpush3.bf16.msra.mxu1 %v1208_v33  ;;  %v559_v45 = vsel %vm553_vm6, %v550_v44, 0.0  ;;  %v1223_v28 = vld [vmem:[%s1575_s7] sm:$0xff] (!%p1063_p6)  }
  0xfe   : > { %v575_v40 = vsel %vm571_vm5, %v565_v31, 0.0  ;;  %1108 = vmatprep.subr.bf16.mxu0 %v1311_v20  ;;  %1124 = vmatprep.subr.bf16.mxu1 %v1311_v20  ;;  %v560_v46 = vsel %vm554_vm7, %v549_v43, 0.0  ;;  %v1315_v29 = vmov (!%p1063_p6), 0.0   ;;  %v1064_v30 = vld [vmem:[%s1576_s8] ss:$0 sm:$0xff] (!%p1063_p6) }
  0xff   : > { %v1198_v41 = vpack.i.bf16 %v575_v40, %v574_v35  ;;  %v887_v32 = vld [vmem:[%s1568_s0] sm:$0xff] (!%p1063_p6) }
 0x101   : > { %1199 = vrot.lane.b32.xlu0 %v1198_v41, %s1313_s20  ;;  %1109 = vmatpush3.bf16.msra.mxu0 %v1209_v38 }
 0x102   : > { %1110 = vmatprep.subr.bf16.mxu0 %v1311_v20  ;;  %1125 = vmatpush3.bf16.msra.mxu1 %v1210_v42 }
 0x103   : > { %1126 = vmatprep.subr.bf16.mxu1 %v1311_v20 }
 0x105   : > { %1111 = vmatpush3.bf16.msra.mxu0 %v1211_v47 }
 0x106   : > { %1112 = vmatprep.subr.bf16.mxu0 %v1311_v20  ;;  %1127 = vmatpush3.bf16.msra.mxu1 %v1212_v48 }
 0x107   : > { %1128 = vmatprep.subr.bf16.mxu1 %v1311_v20 }
 0x109   : > { %1113 = vmatpush3.bf16.msra.mxu0 %v1213_v49 }
 0x10a   : > { %1129 = vmatpush3.bf16.msra.mxu1 %v1214_v50  ;;  %1134 = vmatprep.subr.bf16.mxu0 (!%p1063_p6), %v1315_v29 }
 0x16e   : > { %v1195_v51 = vpop.permute.xlu0 %1194 }
 0x16f   : > { %v1197_v52 = vunpack.i.h.bf16 %v1195_v51  ;;  %v1196_v53 = vunpack.i.l.bf16 %v1195_v51 }
 0x171   : > { %v593_v57 = vsel %vm592_vm9, %v559_v45, %v1196_v53  ;;  %v594_v58 = vsel %vm592_vm9, %v560_v46, %v1197_v52 }
 0x173   : > { %v1200_v54 = vpop.permute.xlu0 %1199 }
 0x174   : > { %v1202_v55 = vunpack.i.h.bf16 %v1200_v54  ;;  %v1201_v56 = vunpack.i.l.bf16 %v1200_v54 }
 0x176   : > { %v596_v59 = vsel %vm595_vm10, %v593_v57, %v1201_v56  ;;  %v597_v60 = vsel %vm595_vm10, %v594_v58, %v1202_v55 }
 0x177   : > { %v598_v61 = vpack.c.bf16 %v597_v60, %v596_v59 }
 0x179   : > { %1115 = vmatmul.mubr.msk.bf16.vlgmr.msra.gmra.mrb[0].mxu0 %vm654_vm11, %v598_v61  ;;  %1131 = vmatmul.mubr.msk.bf16.vlgmr.msra.gmra.mrb[0].mxu1 %vm654_vm11, %v598_v61 }
 0x17a   : > { %1135 = vmatpush3.bf16.msra.mxu0 (!%p1063_p6), %v1223_v28  ;;  %1138 = vmatprep.mubr.msk.bf16.mxu0 (!%p1063_p6), %vm1316_vm12, %v1315_v29 }
 0x17b   : > { %1136 = vmatprep.subr.bf16.mxu0 (!%p1063_p6), %v1315_v29 }
 0x24c   : > { %v692_v63 = vpop.f32.mrb[0].mxu0  ;;  %v788_v0 = vpop.f32.mrb[0].mxu1 }
 0x24d   : > { %v789_v1 = vadd.f32 %v1053_v62, %v788_v0  ;;  %v1116_v2 = vpop.f32.mrb[1].mxu0  ;;  %v1132_v3 = vpop.f32.mrb[1].mxu1  ;;  %v693_v18 = vadd.f32 %v1045_v17, %v692_v63 }
 0x24e   : > { %v695_v4 = vpop.f32.mrb[2].mxu0  ;;  %v791_v5 = vpop.f32.mrb[2].mxu1 }
 0x24f   : > { %v1061_v6 = vmul.f32 -1.442695, %v789_v1  ;;  %v792_v7 = vadd.f32 %v1053_v62, %v791_v5  ;;  %v1117_v8 = vpop.f32.mrb[3].mxu0  ;;  %v1133_v9 = vpop.f32.mrb[3].mxu1  ;;  %v696_v21 = vadd.f32 %v1045_v17, %v695_v4 }
 0x251   : > { %1215 = vpow2.f32 %v1061_v6  ;;  %v1062_v10 = vmul.f32 -1.442695, %v792_v7 }
 0x253   : > { %1217 = vpow2.f32 %v1062_v10 }
 0x25b   : > { %v1216_v11 = vpop.eup %1215 }
 0x25c   : > { %v801_v12 = vadd.f32 1.0, %v1216_v11 }
 0x25d   : > { %v1218_v15 = vpop.eup %1217 }
 0x25e   : > { %1219 = vrcp.f32 %v801_v12  ;;  %v802_v16 = vadd.f32 1.0, %v1218_v15 }
 0x260   : > { %1221 = vrcp.f32 %v802_v16 }
 0x268   : > { %v1220_v19 = vpop.eup %1219 }
 0x269   : > { %v807_v20 = vmul.f32 %v1220_v19, %v693_v18 }
 0x26a   : > { %v1222_v22 = vpop.eup %1221 }
 0x26b   : > { %v809_v23 = vadd.f32 %v807_v20, %v1436_v13  ;;  %v808_v24 = vmul.f32 %v1222_v22, %v696_v21  ;;  %818 = sbr.rel (%p1063_p6) target bundleno = 848 (0x350), region = 64  ;;  %v1224_v13 = vld [vmem:[%s1575_s7 + $0x8] sm:$0xff] (!%p1063_p6)  }
 0x26c   : > { %1137 = vmatpush3.bf16.msra.mxu0 (!%p1063_p6), %v1224_v13 }
 0x26d   : > { %v811_v25 = vmul.f32 0.70710677, %v809_v23  ;;  %v810_v26 = vadd.f32 %v808_v24, %v1438_v14 }
 0x26f   : > { %813 = vst.msk [vmem:[#allocation2] sm:$0xff] %vm592_vm9, %v811_v25  ;;  %v812_v27 = vmul.f32 0.70710677, %v810_v26 }
 0x271   : > { %814 = vst.msk [vmem:[#allocation2 + $0x8] sm:$0xff] %vm592_vm9, %v812_v27  ;;  %v819_v14 = vpack.c.bf16 (!%p1063_p6), %v812_v27, %v811_v25 }
 0x273   : > { %1139 = vmatmul.mubr.msk.bf16.vlgmr.msra.gmra.mrb[0].mxu0 %vm592_vm9, %v819_v14 }
 0x346   : > { %v880_v31 = vpop.f32.mrb[0].mxu0 }
 0x347   : > { %v881_v33 = vadd.f32 %v1064_v30, %v880_v31  ;;  %v1140_v34 = vpop.f32.mrb[1].mxu0 }
 0x348   : > { %v883_v35 = vpop.f32.mrb[2].mxu0 }
 0x349   : > { %v889_v37 = vadd.f32 %v887_v32, %v881_v33  ;;  %893 = vst.msk [vmem:[#allocation3] sm:$0xff] %vm592_vm9, %v881_v33  ;;  %v884_v38 = vadd.f32 %v1064_v30, %v883_v35  ;;  %v1141_v39 = vpop.f32.mrb[3].mxu0 }
 0x34b   : > { %v891_v40 = vmul.f32 0.70710677, %v889_v37  ;;  %v890_v41 = vadd.f32 %v888_v36, %v884_v38  ;;  %894 = vst.msk [vmem:[#allocation3 + $0x8] sm:$0xff] %vm592_vm9, %v884_v38 }
 0x34d   : > { %895 = vst.msk [vmem:[#allocation5] sm:$0xff] %vm592_vm9, %v891_v40  ;;  %v892_v42 = vmul.f32 0.70710677, %v890_v41 }
 0x34f   : > { %896 = vst.msk [vmem:[#allocation5 + $0x8] sm:$0xff] %vm592_vm9, %v892_v42 }
 0x350 PF: > { %p1511_p7 = scmp.eq.s32.totalorder %s1033_s16, 1  ;;  %s1317_s20 = smov [#allocation3]  }
 0x351   : > { %s906_s28 = sshll.u32 %s1317_s20, 4  ;;  %s907_s28 = int_to_ptr.vmem [resolvable:$true] %s906_s28 }
 0x352   : > { %s1225_s11 = scalar_lea.vmem %s907_s28, 256  ;;  %p1232_p11 = scmp.lt.s32.totalorder %s907_s28, %s907_s28 }
 0x353   : > { %p1226_p8 = scmp.ne.s32.totalorder %s907_s28, %s1225_s11  ;;  %p1233_p12 = scmp.lt.s32.totalorder %s1225_s11, %s1225_s11 }
 0x355   : > { %p1227_p9 = pnand %p1226_p8, %p1511_p7  ;;  %p1234_p13 = por %p1233_p12, %p1232_p11 }
 0x357   : > { %p1228_p10 = pneg %p1227_p9 }
 0x359   : > { %p1235_p0 = pnand %p1234_p13, %p1228_p10 }
 0x35b   : > { %1238 = shalt.err (!%p1235_p0)
}
 0x35c   : > { %s1239_s16 = scalar_lea.hbm %s1577_s9, 256 }
 0x35d   : > { %p1240_p1 = scmp.ne.s32.totalorder %s1577_s9, %s1239_s16  ;;  %p1245_p4 = scmp.lt.u32.totalorder %s1239_s16, %s1577_s9 }
 0x35f   : > { %p1241_p2 = pnand %p1240_p1, %p1511_p7 }
 0x361   : > { %p1242_p3 = pneg %p1241_p2 }
 0x363   : > { %p1247_p5 = pnand %p1245_p4, %p1242_p3 }
 0x365   : > { %1250 = shalt.err (!%p1247_p5)
}
 0x366   : > { %s1318_s13 = smov 128   ;;  %s1319_s26 = smov 8  }
 0x367   : > { %1144 = dma.vmem_to_hbm [thread:$0]  (%p1511_p7), %s907_s28, 256, %s1577_s9, [#allocation4], %s1318_s13, %s1318_s13, %s1319_s26  }
 0x368   : > { %s1320_s29 = smov [#allocation5]  }
 0x369   : > { %s922_s30 = sshll.u32 %s1320_s29, 4  ;;  %s923_s30 = int_to_ptr.vmem [resolvable:$true] %s922_s30 }
 0x36a   : > { %s1251_s20 = scalar_lea.vmem %s923_s30, 256  ;;  %p1258_p10 = scmp.lt.s32.totalorder %s923_s30, %s923_s30 }
 0x36b   : > { %p1252_p6 = scmp.ne.s32.totalorder %s923_s30, %s1251_s20  ;;  %p1259_p11 = scmp.lt.s32.totalorder %s1251_s20, %s1251_s20 }
 0x36d   : > { %p1253_p8 = pnand %p1252_p6, %p1511_p7  ;;  %p1260_p12 = por %p1259_p11, %p1258_p10 }
 0x36f   : > { %p1254_p9 = pneg %p1253_p8 }
 0x371   : > { %p1261_p13 = pnand %p1260_p12, %p1254_p9 }
 0x373   : > { %1264 = shalt.err (!%p1261_p13)
}
 0x374   : > { %s1265_s21 = scalar_lea.hbm %s1578_s10, 256 }
 0x375   : > { %p1266_p0 = scmp.ne.s32.totalorder %s1578_s10, %s1265_s21  ;;  %p1271_p3 = scmp.lt.u32.totalorder %s1265_s21, %s1578_s10 }
 0x377   : > { %p1267_p1 = pnand %p1266_p0, %p1511_p7 }
 0x379   : > { %p1268_p2 = pneg %p1267_p1 }
 0x37b   : > { %p1273_p4 = pnand %p1271_p3, %p1268_p2 }
 0x37d   : > { %1276 = shalt.err (!%p1273_p4)
}
 0x37e   : > { %1146 = dma.vmem_to_hbm [thread:$0]  (%p1511_p7), %s923_s30, 256, %s1578_s10, [#allocation6], %s1318_s13, %s1318_s13, %s1319_s26  }
 0x37f   : > { %1290 = dma.done.wait (%p1511_p7), [#allocation4], 256  }
 0x380   : > { %1292 = vsyncadd (%p1511_p7), [#allocation4], 4294967040 }
 0x381   : > { %1294 = dma.done.wait (%p1511_p7), [#allocation6], 256  }
 0x382   : > { %1296 = vsyncadd (%p1511_p7), [#allocation6], 4294967040 }
 0x383 PF: > { %s23_s15 = sadd.s32 1, %s1307_s15   ;;  %s1580_s13 = smov %s1303_s14 }
 0x384   : > { %p20_p5 = scmp.ge.s32.totalorder %s23_s15, 4   ;;  %s1581_s14 = smov %s1583_s17 }
 0x386   :  { %22 = sbr.rel (!%p20_p5) target bundleno = 3 (0x3), region = 113 }
 0x38d   :  { %942 = vsyncpa [#allocation4], 1 }
 0x38e   :  { %944 = vsyncpa [#allocation4 + $0x1], 1 }
 0x38f   :  { %945 = vsyncpa [#allocation6], 1 }

</bundles_post_ra>
